<compile_context>
chip_gen: v5e
topology: v5e:2x2
jax: 0.10.0
libtpu: 0.0.40
codegen_flags: <defaults>
</compile_context>

<pallas_src>
import functools

import jax
import jax.numpy as jnp
from jax import lax
from jax.experimental import pallas as pl
from jax.experimental.pallas import tpu as pltpu


def _round_up(x, m):
    return ((x + m - 1) // m) * m


def _textcnn_kernel(lhs_ref, rhs_ref, bias_ref, mask_ref, fc_ref, out_ref,
                    *, kmax, tap_stride, fuse_embedding):
    seq_len, gfp = mask_ref.shape
    bl = lhs_ref.shape[0]            # block_b * seq_len rows
    blk_b = bl // seq_len
    wp = rhs_ref.shape[-1]           # matmul output width (multiple of 128)

    if fuse_embedding:
        # Embedding lookup fused with the conv: one-hot(ids) @ (emb_table @ W_all).
        vp = rhs_ref.shape[0]
        ids = lhs_ref[...]                                       # (bl, 1) int32
        iota = lax.broadcasted_iota(jnp.int32, (bl, vp), 1)
        lhs = jnp.where(ids == iota, 1.0, 0.0).astype(rhs_ref.dtype)   # (bl, vp)
    else:
        lhs = lhs_ref[...]                                        # (bl, E)

    # One wide MXU matmul covering the lookup (if fused) and every tap of every
    # filter size; tap i's G*F real filter columns start at lane i*tap_stride.
    p = jnp.dot(lhs, rhs_ref[...], preferred_element_type=jnp.float32)  # (bl, wp) f32

    # conv[r, c] = sum_i p[r + i, i*tap_stride + c].  Rolled-in garbage
    # rows/lanes are zeroed post-ReLU by the mask (finite inputs assumed).
    conv = p[:, :gfp]
    for i in range(1, kmax):
        off = i * tap_stride
        if off % 128 == 0 and off + gfp <= wp:
            tap = p[:, off:off + gfp]                             # lane-aligned slice
        else:
            tap = pltpu.roll(p, shift=wp - off, axis=1)[:, :gfp]  # lane roll (XLU)
        conv = conv + pltpu.roll(tap, shift=bl - i, axis=0)       # == jnp.roll(tap, -i, 0)

    conv = jnp.maximum(conv + bias_ref[...], 0.0)                 # bias + ReLU (f32)

    # Masked mean-pool over the valid conv positions of each filter size.
    pooled = jnp.sum(conv.reshape(blk_b, seq_len, gfp) * mask_ref[...], axis=1)

    # Classifier (dropout = identity in eval; second ReLU is a no-op).  Tiny
    # matmul -> keep f32 operands even on the bf16 path.
    out_ref[...] = jnp.dot(pooled, fc_ref[...], preferred_element_type=jnp.float32)


def _pack_params(conv_ws, conv_bs, fc_w, filter_sizes, seq_len):
    """Pack conv weights tap-major into one matmul RHS; build bias/mask/fc pads."""
    num_groups = len(filter_sizes)
    kmax = max(filter_sizes)
    _, emb_dim, num_filters = conv_ws[0].shape
    gf = num_groups * num_filters
    gfp = _round_up(gf, 128)
    num_classes = fc_w.shape[1]
    cpad = _round_up(num_classes, 128)

    # If every tap's GF real columns fit one 128-lane block, pack them at
    # stride GF (narrow intermediate); otherwise one GFp-wide block per tap.
    tap_stride = gf if kmax * gf <= 128 else gfp
    wp = _round_up((kmax - 1) * tap_stride + gf, 128)

    w_all = jnp.zeros((emb_dim, wp), jnp.float32)
    bias_all = jnp.zeros((1, gfp), jnp.float32)
    mask = jnp.zeros((seq_len, gfp), jnp.float32)
    for g, (k, w, b) in enumerate(zip(filter_sizes, conv_ws, conv_bs)):
        c0 = g * num_filters
        for i in range(k):
            w_all = w_all.at[:, i * tap_stride + c0:
                             i * tap_stride + c0 + num_filters].set(w[i])
        bias_all = bias_all.at[0, c0:c0 + num_filters].set(b)
        lk = seq_len - k + 1
        col = (jnp.arange(seq_len) < lk).astype(jnp.float32) / lk        # (L,)
        mask = mask.at[:, c0:c0 + num_filters].set(
            jnp.broadcast_to(col[:, None], (seq_len, num_filters)))

    fc_pad = jnp.zeros((gfp, cpad), jnp.float32)
    fc_pad = fc_pad.at[:gf, :num_classes].set(fc_w.astype(jnp.float32))
    return w_all, bias_all, mask, fc_pad, kmax, tap_stride, gfp, cpad, wp


def textcnn_forward(tokens, emb_table, conv_ws, conv_bs, fc_w, filter_sizes, *,
                    block_b=None, compute_dtype=jnp.bfloat16,
                    max_fused_vocab=1024):
    """tokens: (B, L) int32 ids. Returns logits (B, num_classes) in f32."""
    batch, seq_len = tokens.shape
    vocab, emb_dim = emb_table.shape
    num_classes = fc_w.shape[1]

    (w_all, bias_all, mask, fc_pad, kmax, tap_stride, gfp, cpad, wp) = \
        _pack_params(conv_ws, conv_bs, fc_w, tuple(filter_sizes), seq_len)

    fuse_embedding = vocab <= max_fused_vocab
    if fuse_embedding:
        # Pre-fuse lookup table with the conv weights (one-time weight
        # transform): row v of `rhs` is emb_table[v] @ W_all, so the kernel's
        # single matmul performs lookup + all conv taps at once.
        vp = _round_up(vocab, 128)
        emb_pad = jnp.zeros((vp, emb_dim), jnp.float32).at[:vocab, :].set(
            emb_table.astype(jnp.float32))
        rhs = (emb_pad @ w_all).astype(compute_dtype)             # (vp, wp)
        lhs_cols, k_dim = 1, vp
    else:
        # TODO(synk): large-vocab path still gathers (B, L, E) in HBM; replace
        # with scalar-prefetched ids + per-row make_async_copy gathers.
        rhs = w_all.astype(compute_dtype)                         # (E, wp)
        lhs_cols, k_dim = emb_dim, emb_dim

    # ---- Generation-aware batch-block sizing --------------------------------
    try:
        vmem_cap = int(pltpu.get_tpu_info().vmem_capacity_bytes)
    except Exception:
        vmem_cap = 64 * 1024 * 1024                               # conservative (v7x)
    small_vmem = vmem_cap <= 64 * 1024 * 1024
    budget = (8 if small_vmem else 24) * 1024 * 1024              # intermediates budget
    vmem_limit = (48 if small_vmem else 80) * 1024 * 1024

    cd_bytes = jnp.dtype(compute_dtype).itemsize
    per_row = seq_len * ((wp + gfp) * 4 + k_dim * cd_bytes)       # p + conv + lhs/one-hot
    b_ru = _round_up(batch, 8)
    if block_b is None:
        bb = max(8, min(budget // max(per_row, 1), 1024))
        bb = min((bb // 8) * 8, b_ru)
        n = -(-b_ru // bb)
        if n == 1 and b_ru >= 16:
            n = 2                      # keep both v7x TensorCores busy ("parallel")
        block_b = _round_up(-(-b_ru // n), 8)
    else:
        block_b = min(max(8, (int(block_b) // 8) * 8), b_ru)
    n_blocks = -(-b_ru // block_b)
    b_pad = n_blocks * block_b

    # ---- Kernel inputs: 2-D, reshaped in the wrapper (no in-kernel relayout) --
    if b_pad != batch:
        tokens = jnp.pad(tokens, ((0, b_pad - batch), (0, 0)))    # pad id 0 is valid
    if fuse_embedding:
        lhs = tokens.astype(jnp.int32).reshape(b_pad * seq_len, 1)
    else:
        lhs = jnp.take(emb_table, tokens, axis=0).astype(compute_dtype)
        lhs = lhs.reshape(b_pad * seq_len, emb_dim)

    kernel = functools.partial(_textcnn_kernel, kmax=kmax, tap_stride=tap_stride,
                               fuse_embedding=fuse_embedding)

    out = pl.pallas_call(
        kernel,
        out_shape=jax.ShapeDtypeStruct((b_pad, cpad), jnp.float32),
        grid=(n_blocks,),
        in_specs=[
            pl.BlockSpec((block_b * seq_len, lhs_cols), lambda b: (b, 0)),  # ids / emb rows
            pl.BlockSpec(rhs.shape, lambda b: (0, 0)),            # fused table / conv W
            pl.BlockSpec((1, gfp), lambda b: (0, 0)),             # conv bias
            pl.BlockSpec((seq_len, gfp), lambda b: (0, 0)),       # pool mask/scale
            pl.BlockSpec((gfp, cpad), lambda b: (0, 0)),          # fc weight (f32)
        ],
        out_specs=pl.BlockSpec((block_b, cpad), lambda b: (b, 0)),
        compiler_params=pltpu.CompilerParams(
            dimension_semantics=("parallel",),
            vmem_limit_bytes=vmem_limit,
        ),
    )(lhs, rhs, bias_all, mask, fc_pad)

    return out[:batch, :num_classes]


def _reference_forward(tokens, emb_table, conv_ws, conv_bs, fc_w, filter_sizes):
    """Pure-JAX f32 reference matching the PyTorch forward (eval mode)."""
    emb = jnp.take(emb_table, tokens, axis=0).astype(jnp.float32)
    seq_len = emb.shape[1]
    feats = []
    for w, b, k in zip(conv_ws, conv_bs, filter_sizes):
        lk = seq_len - k + 1
        conv = sum(jnp.einsum('ble,ef->blf', emb[:, i:i + lk, :], w[i])
                   for i in range(k)) + b
        conv = jnp.maximum(conv, 0.0)
        pooled = jnp.maximum(conv.mean(axis=1), 0.0)
        feats.append(pooled)
    return jnp.concatenate(feats, axis=1) @ fc_w


if __name__ == "__main__":
    # Small config consistent with the module's __init__.
    n_vocab = 20
    embed = 32
    num_filters = 4
    filter_sizes = (2, 3, 4)
    pad_size = 8            # sequence length
    num_classes = 3
    batch = 10              # not a multiple of 8 -> exercises batch padding

    key = jax.random.PRNGKey(0)
    k_emb, k_tok, k_fc, *k_rest = jax.random.split(key, 3 + 2 * len(filter_sizes))

    # Embedding table, padding_idx row zeroed (as nn.Embedding with padding_idx).
    emb_table = jax.random.normal(k_emb, (n_vocab, embed), jnp.float32)
    emb_table = emb_table.at[n_vocab - 1].set(0.0)

    # Conv weights stored as (k, E, F) (PyTorch holds (F, 1, k, E)).
    conv_ws, conv_bs = [], []
    for k_sz, kw in zip(filter_sizes, k_rest[:len(filter_sizes)]):
        conv_ws.append(0.1 * jax.random.normal(kw, (k_sz, embed, num_filters),
                                               jnp.float32))
    for kb in k_rest[len(filter_sizes):]:
        conv_bs.append(0.1 * jax.random.normal(kb, (num_filters,), jnp.float32))

    # FC weight stored pre-transposed: (len(filter_sizes)*F, num_classes), no bias.
    fc_w = 0.1 * jax.random.normal(
        k_fc, (len(filter_sizes) * num_filters, num_classes), jnp.float32)

    tokens = jax.random.randint(k_tok, (batch, pad_size), 0, n_vocab - 1,
                                dtype=jnp.int32)

    ref = _reference_forward(tokens, emb_table, conv_ws, conv_bs, fc_w,
                             filter_sizes)

    # Fused-embedding path, f32 matmuls (tight check).  Auto block sizing gives
    # two 8-row blocks here, exercising padding and the 'parallel' grid axis.
    out_f32 = textcnn_forward(tokens, emb_table, conv_ws, conv_bs, fc_w,
                              filter_sizes, compute_dtype=jnp.float32)
    out_f32 = jax.block_until_ready(out_f32)
    assert out_f32.shape == (batch, num_classes)
    assert jnp.allclose(out_f32, ref, atol=1e-4, rtol=1e-4), "f32 fused mismatch"

    # Default path: fused embedding gather + bf16 MXU operands (f32 accumulation).
    out_bf16 = textcnn_forward(tokens, emb_table, conv_ws, conv_bs, fc_w,
                               filter_sizes)
    out_bf16 = jax.block_until_ready(out_bf16)
    assert jnp.allclose(out_bf16, ref, atol=5e-2, rtol=5e-2), "bf16 fused mismatch"

    # Large-vocab fallback path (embedding gathered in the wrapper), f32.
    out_fb = textcnn_forward(tokens, emb_table, conv_ws, conv_bs, fc_w,
                             filter_sizes, compute_dtype=jnp.float32,
                             max_fused_vocab=0)
    out_fb = jax.block_until_ready(out_fb)
    assert jnp.allclose(out_fb, ref, atol=1e-4, rtol=1e-4), "fallback mismatch"

    print("KERNEL_OK")
</pallas_src>

<mosaic_0001>
module attributes {stable_mosaic.version = 11 : i64} {
  func.func @_textcnn_kernel(%arg0: i32, %arg1: memref<64x1xi32, #tpu.memory_space<vmem>>, %arg2: memref<128x128xf32, #tpu.memory_space<vmem>>, %arg3: memref<1x128xf32, #tpu.memory_space<vmem>>, %arg4: memref<8x128xf32, #tpu.memory_space<vmem>>, %arg5: memref<128x128xf32, #tpu.memory_space<vmem>>, %arg6: memref<8x128xf32, #tpu.memory_space<vmem>>) attributes {dimension_semantics = [#tpu.dimension_semantics<parallel>], iteration_bounds = array<i64: 2>, scalar_prefetch = 0 : i64, scratch_operands = 0 : i64, tpu.core_type = #tpu.core_type<tc>, window_params = [{transform_indices = @transform_0, window_bounds = array<i64: 64, 1>}, {pipeline_mode = #tpu.pipeline_mode<synchronous>, transform_indices = @transform_1, window_bounds = array<i64: 128, 128>}, {pipeline_mode = #tpu.pipeline_mode<synchronous>, transform_indices = @transform_2, window_bounds = array<i64: 1, 128>}, {pipeline_mode = #tpu.pipeline_mode<synchronous>, transform_indices = @transform_3, window_bounds = array<i64: 8, 128>}, {pipeline_mode = #tpu.pipeline_mode<synchronous>, transform_indices = @transform_4, window_bounds = array<i64: 128, 128>}, {transform_indices = @transform_5, window_bounds = array<i64: 8, 128>}]} {
    %c0 = arith.constant 0 : index
    %c0_0 = arith.constant 0 : index
    %0 = vector.load %arg1[%c0, %c0_0] : memref<64x1xi32, #tpu.memory_space<vmem>>, vector<64x1xi32>
    %1 = tpu.iota {dimensions = array<i32: 1>} : vector<64x128xi32>
    %2 = vector.broadcast %0 : vector<64x1xi32> to vector<64x128xi32>
    %3 = arith.cmpi eq, %2, %1 : vector<64x128xi32>
    %cst = arith.constant 1.000000e+00 : f32
    %cst_1 = arith.constant 0.000000e+00 : f32
    %4 = vector.broadcast %cst : f32 to vector<64x128xf32>
    %5 = vector.broadcast %cst_1 : f32 to vector<64x128xf32>
    %6 = arith.select %3, %4, %5 : vector<64x128xi1>, vector<64x128xf32>
    %c0_2 = arith.constant 0 : index
    %c0_3 = arith.constant 0 : index
    %7 = vector.load %arg2[%c0_2, %c0_3] : memref<128x128xf32, #tpu.memory_space<vmem>>, vector<128x128xf32>
    %cst_4 = arith.constant dense<0.000000e+00> : vector<64x128xf32>
    %8 = tpu.matmul %6, %7, %cst_4 {dimension_numbers = #tpu.dot_dimension_numbers<[1], [0], [0], [1], [0, 0, 1, 1], [], []>} : vector<64x128xf32>, vector<128x128xf32>, vector<64x128xf32> -> vector<64x128xf32>
    %c116_i32 = arith.constant 116 : i32
    %9 = tpu.dynamic_rotate %8 by %c116_i32 dim 1 : vector<64x128xf32>, i32 -> vector<64x128xf32>
    %c63_i32 = arith.constant 63 : i32
    %10 = tpu.dynamic_rotate %9 by %c63_i32 dim 0 : vector<64x128xf32>, i32 -> vector<64x128xf32>
    %11 = arith.addf %8, %10 : vector<64x128xf32>
    %c104_i32 = arith.constant 104 : i32
    %12 = tpu.dynamic_rotate %8 by %c104_i32 dim 1 : vector<64x128xf32>, i32 -> vector<64x128xf32>
    %c62_i32 = arith.constant 62 : i32
    %13 = tpu.dynamic_rotate %12 by %c62_i32 dim 0 : vector<64x128xf32>, i32 -> vector<64x128xf32>
    %14 = arith.addf %11, %13 : vector<64x128xf32>
    %c92_i32 = arith.constant 92 : i32
    %15 = tpu.dynamic_rotate %8 by %c92_i32 dim 1 : vector<64x128xf32>, i32 -> vector<64x128xf32>
    %c61_i32 = arith.constant 61 : i32
    %16 = tpu.dynamic_rotate %15 by %c61_i32 dim 0 : vector<64x128xf32>, i32 -> vector<64x128xf32>
    %17 = arith.addf %14, %16 : vector<64x128xf32>
    %c0_5 = arith.constant 0 : index
    %c0_6 = arith.constant 0 : index
    %18 = vector.load %arg3[%c0_5, %c0_6] : memref<1x128xf32, #tpu.memory_space<vmem>>, vector<1x128xf32>
    %19 = vector.broadcast %18 : vector<1x128xf32> to vector<64x128xf32>
    %20 = arith.addf %17, %19 : vector<64x128xf32>
    %cst_7 = arith.constant 0.000000e+00 : f32
    %21 = vector.broadcast %cst_7 : f32 to vector<64x128xf32>
    %22 = arith.maximumf %20, %21 : vector<64x128xf32>
    %23 = vector.shape_cast %22 : vector<64x128xf32> to vector<8x8x128xf32>
    %c0_8 = arith.constant 0 : index
    %c0_9 = arith.constant 0 : index
    %24 = vector.load %arg4[%c0_8, %c0_9] : memref<8x128xf32, #tpu.memory_space<vmem>>, vector<8x128xf32>
    %25 = vector.shape_cast %24 : vector<8x128xf32> to vector<1x8x128xf32>
    %26 = vector.broadcast %25 : vector<1x8x128xf32> to vector<8x8x128xf32>
    %27 = arith.mulf %23, %26 : vector<8x8x128xf32>
    %cst_10 = arith.constant dense<0.000000e+00> : vector<8x128xf32>
    %28 = vector.multi_reduction <add>, %27, %cst_10 [1] : vector<8x8x128xf32> to vector<8x128xf32>
    %c0_11 = arith.constant 0 : index
    %c0_12 = arith.constant 0 : index
    %29 = vector.load %arg5[%c0_11, %c0_12] : memref<128x128xf32, #tpu.memory_space<vmem>>, vector<128x128xf32>
    %cst_13 = arith.constant dense<0.000000e+00> : vector<8x128xf32>
    %30 = tpu.matmul %28, %29, %cst_13 {dimension_numbers = #tpu.dot_dimension_numbers<[1], [0], [0], [1], [0, 0, 1, 1], [], []>} : vector<8x128xf32>, vector<128x128xf32>, vector<8x128xf32> -> vector<8x128xf32>
    %c0_14 = arith.constant 0 : index
    %c0_15 = arith.constant 0 : index
    %31 = vector.load %arg6[%c0_14, %c0_15] : memref<8x128xf32, #tpu.memory_space<vmem>>, vector<8x128xf32>
    tpu.vector_store %arg6[%c0_14, %c0_15], %30 {strides = array<i32>} : memref<8x128xf32, #tpu.memory_space<vmem>>, vector<8x128xf32>,
    return
  }
  func.func @transform_0(%arg0: i32) -> (i32, i32) {
    %c0_i32 = arith.constant 0 : i32
    %c0_i32_0 = arith.constant 0 : i32
    return %arg0, %c0_i32 : i32, i32
  }
  func.func @transform_1(%arg0: i32) -> (i32, i32) {
    %c0_i32 = arith.constant 0 : i32
    %c0_i32_0 = arith.constant 0 : i32
    %c0_i32_1 = arith.constant 0 : i32
    return %c0_i32, %c0_i32_0 : i32, i32
  }
  func.func @transform_2(%arg0: i32) -> (i32, i32) {
    %c0_i32 = arith.constant 0 : i32
    %c0_i32_0 = arith.constant 0 : i32
    %c0_i32_1 = arith.constant 0 : i32
    return %c0_i32, %c0_i32_0 : i32, i32
  }
  func.func @transform_3(%arg0: i32) -> (i32, i32) {
    %c0_i32 = arith.constant 0 : i32
    %c0_i32_0 = arith.constant 0 : i32
    %c0_i32_1 = arith.constant 0 : i32
    return %c0_i32, %c0_i32_0 : i32, i32
  }
  func.func @transform_4(%arg0: i32) -> (i32, i32) {
    %c0_i32 = arith.constant 0 : i32
    %c0_i32_0 = arith.constant 0 : i32
    %c0_i32_1 = arith.constant 0 : i32
    return %c0_i32, %c0_i32_0 : i32, i32
  }
  func.func @transform_5(%arg0: i32) -> (i32, i32) {
    %c0_i32 = arith.constant 0 : i32
    %c0_i32_0 = arith.constant 0 : i32
    return %arg0, %c0_i32 : i32, i32
  }
}

</mosaic_0001>

<bundles_post_ra>
// kernel: tpu_custom_call.1
= control target key start
LH: loop header
LB: loop body
LE: loop exit
PB: predicated region body
PF: predicated region fallthrough
CT: control target
= control target key end

     0   :  { %10 = vsyncpa [#allocation3], 0  ;;  %s1371_s0 = inlined_call_operand.vmem [shape: s32[128,1], index: 0, kind: input, shape index: {}]   ;;  %s1372_s1 = inlined_call_operand.vmem [shape: f32[128,128], index: 1, kind: input, shape index: {}]   ;;  %s1373_s2 = inlined_call_operand.vmem [shape: f32[1,128], index: 2, kind: input, shape index: {}]   ;;  %s1374_s3 = inlined_call_operand.hbm [shape: f32[8,128], index: 3, kind: input, shape index: {}]   ;;  %s1375_s4 = inlined_call_operand.hbm [shape: f32[128,128], index: 4, kind: input, shape index: {}]   ;;  %s1376_s5 = inlined_call_operand.hbm [shape: f32[16,128], index: 5, kind: output, shape index: {}]  }
   0x1   :  { %11 = vsyncpa [#allocation6], 0 }
   0x2   :  { %12 = vsyncpa [#allocation4], 0 }
   0x3   :  { %14 = vsyncpa [#allocation4 + $0x1], 0  ;;  %s1020_s18 = smov 0   ;;  %s1022_s19 = smov 0  }
   0x4   :  { %s1024_s20 = smov 0   ;;  %s1026_s21 = smov 0  }
   0x5 LB: > { %s1041_s22 = sadd.s32 4294967295, %s979_s21   ;;  %s723_s23 = sadd.s32 4294967294, %s979_s21   ;;  %s979_s21 = sphi %s1026_s21, %s1383_s21   ;;  %s975_s20 = sphi %s1024_s20, %s1382_s20   ;;  %s971_s19 = sphi %s1022_s19, %s1381_s19   ;;  %s967_s18 = sphi %s1020_s18, %s1380_s18  }
   0x6   : > { %s1045_s24 = sadd.s32 1, %s979_s21   ;;  %s137_s25 = sadd.s32 1, %s975_s20 }
   0x7   : > { %s134_s26 = ssub.s32 %s979_s21, %s1045_s24  ;;  %p147_p0 = scmp.ne.s32.totalorder %s975_s20, %s971_s19 }
   0x8   : > { %p135_p1 = scmp.eq.s32.totalorder %s134_s26, 0  ;;  %p148_p2 = scmp.eq.s32.totalorder %s1041_s22, 1 }
   0x9   : > { %p153_p3 = scmp.ne.s32.totalorder %s971_s19, %s967_s18  ;;  %p154_p4 = scmp.eq.s32.totalorder %s723_s23, 1 }
   0xa   : > { %s1056_s27 = scalar_select %p135_p1, %s975_s20, %s137_s25  }
   0xb   : > { %p1058_p5 = por %p148_p2, %p147_p0  ;;  %p1062_p6 = por %p154_p4, %p153_p3 }
   0xc   : > { %p724_p7 = scmp.ge.s32.totalorder %s979_s21, 1  ;;  %p161_p8 = scmp.lt.s32.totalorder %s979_s21, 3 }
   0xd   : > { %p799_p9 = scmp.eq.s32.totalorder %s1041_s22, 0  ;;  %s179_s8 = sshll.u32 %s1374_s3, 4  ;;  %s180_s8 = int_to_ptr.hbm [resolvable:$true] %s179_s8 }
   0xe   : > { %p1069_p10 = pnand %p724_p7, %p161_p8  ;;  %s981_s9 = smov [#allocation2]  }
   0xf   : > { %s181_s10 = sshll.u32 %s981_s9, 4  ;;  %s190_s13 = sshll.u32 %s1375_s4, 4  ;;  %s182_s10 = int_to_ptr.vmem [resolvable:$true] %s181_s10  ;;  %s191_s13 = int_to_ptr.hbm [resolvable:$true] %s190_s13 }
  0x10   : > { %p788_p11 = pneg %p1069_p10  ;;  %s982_s14 = smov [#allocation5]  }
  0x11   : > { %s192_s15 = sshll.u32 %s982_s14, 4  ;;  %s983_s16 = smov 128   ;;  %s193_s15 = int_to_ptr.vmem [resolvable:$true] %s192_s15 }
  0x12   : > { %p789_p12 = pnand %p799_p9, %p788_p11  ;;  %s984_s17 = smov 8  }
  0x13   : > { %217 = sbr.rel (%p1069_p10) target bundleno = 609 (0x261), region = 40 }
  0x14   : > { %791 = dma.hbm_to_vmem [thread:$0]  (!%p789_p12), %s180_s8, 128, %s182_s10, [#allocation3]  }
  0x15   : > { %794 = dma.hbm_to_vmem [thread:$0]  (!%p789_p12), %s191_s13, 2048, %s193_s15, [#allocation6], %s983_s16, %s983_s16, %s984_s17  }
  0x18   : > { %954 = dma.done.wait (%p799_p9), [#allocation3], 128  }
  0x19   : > { %956 = vsyncadd (%p799_p9), [#allocation3], 4294967168 }
  0x1a   : > { %958 = dma.done.wait (%p799_p9), [#allocation6], 2048  }
  0x1b   : > { %960 = vsyncadd (%p799_p9), [#allocation6], 4294965248  ;;  %s1094_s23 = sshll.u32 %s1041_s22, 3  ;;  %v985_v0 = vmov 0   ;;  %v322_v4 = vld [vmem:[%s1372_s1 + $0x78] sm:$0xff]  ;;  %v321_v5 = vld [vmem:[%s1372_s1 + $0x70] sm:$0xff]  ;;  %v265_v25 = vlaneseq }
  0x1c   : > { %846 = vset.pattern.permute.xlu1 %v985_v0  ;;  %845 = vset.pattern.permute.xlu0 %v985_v0  ;;  %p252_p13 = scmp.lt.s32.totalorder %s1094_s23, 15  ;;  %v320_v6 = vld [vmem:[%s1372_s1 + $0x68] sm:$0xff]  ;;  %v319_v9 = vld [vmem:[%s1372_s1 + $0x60] sm:$0xff]  ;;  %v318_v11 = vld [vmem:[%s1372_s1 + $0x58] sm:$0xff]  ;;  %v986_v28 = vmov 1.0   ;;  %s987_s8 = smov 104  }
  0x1d   : > { %847 = vset.pattern.permute.xlu2 %v985_v0  ;;  %323 = vmatpush.msra.mxu0 %v322_v4  ;;  %v317_v12 = vld [vmem:[%s1372_s1 + $0x50] sm:$0xff]  ;;  %v316_v13 = vld [vmem:[%s1372_s1 + $0x48] sm:$0xff]  ;;  %v315_v16 = vld [vmem:[%s1372_s1 + $0x40] sm:$0xff]  ;;  %v266_v26 = vand.u32 127, %v265_v25  ;;  %s988_s9 = smov 116   ;;  %s989_s10 = smov 92  }
  0x1e   : > { %s253_s25 = scalar_select %p252_p13, %s1094_s23, 15  ;;  %746 = vmatpush.msra.mxu2 %v322_v4  ;;  %747 = vmatpush.msra.mxu3 %v322_v4  ;;  %v314_v17 = vld [vmem:[%s1372_s1 + $0x38] sm:$0xff]  ;;  %v313_v18 = vld [vmem:[%s1372_s1 + $0x30] sm:$0xff]  ;;  %v312_v19 = vld [vmem:[%s1372_s1 + $0x28] sm:$0xff]  ;;  %v1210_v57 = vshrl.u32 %v265_v25, 7  ;;  %vm590_vm11 = vcmask 1041409  }
  0x1f   : > { %324 = vmatpush.msra.mxu0 %v321_v5  ;;  %v311_v20 = vld [vmem:[%s1372_s1 + $0x20] sm:$0xff]  ;;  %v310_v21 = vld [vmem:[%s1372_s1 + $0x18] sm:$0xff]  ;;  %v309_v22 = vld [vmem:[%s1372_s1 + $0x10] sm:$0xff]  ;;  %vm592_vm12 = vcmask 1042434   ;;  %vm594_vm13 = vcmask 1043459   ;;  %vm596_vm14 = vcmask 1044484   ;;  %s637_s16 = scalar_lea.hbm %s1376_s5, %s1094_s23 }
  0x20   : > { %s733_s26 = sshll.u32 %s253_s25, 3  ;;  %748 = vmatpush.msra.mxu2 %v321_v5  ;;  %749 = vmatpush.msra.mxu3 %v321_v5  ;;  %v308_v23 = vld [vmem:[%s1372_s1 + $0x8] sm:$0xff]  ;;  %v307_v24 = vld [vmem:[%s1372_s1] sm:$0xff]  ;;  %vm390_vm8 = vcmp.lt.s32.totalorder %v1210_v57, 7  ;;  %v580_v0 = vld [vmem:[#allocation5 + $0x70] sm:$0xff]  ;;  %vm431_vm9 = vcmp.lt.s32.totalorder %v1210_v57, 6 }
  0x21   : > { %s1101_s7 = scalar_lea.vmem %s1371_s0, %s733_s26  ;;  %325 = vmatpush.msra.mxu0 %v320_v6  ;;  %v581_v60 = vld [vmem:[#allocation5 + $0x78] sm:$0xff]  ;;  %vm472_vm10 = vcmp.lt.s32.totalorder %v1210_v57, 5  ;;  %vm598_vm15 = vcmask 1045509   ;;  %s248_s12 = sand.u32 1, %s971_s19  }
  0x22   : > { %v260_v1 = vld [vmem:[%s1101_s7 + $0x18] sm:$0xff]  ;;  %v259_v2 = vld [vmem:[%s1101_s7 + $0x10] sm:$0xff]  ;;  %v257_v3 = vld [vmem:[%s1101_s7] sm:$0xff]  ;;  %750 = vmatpush.msra.mxu2 %v320_v6  ;;  %751 = vmatpush.msra.mxu3 %v320_v6  ;;  %s731_s13 = sshll.u32 %s248_s12, 3  ;;  %s641_s26 = sshll.u32 %s637_s16, 4  ;;  %s642_s26 = int_to_ptr.hbm [resolvable:$true] %s641_s26 }
  0x23   : > { %277 = vperm.xlu1 %846, %v260_v1   ;;  %274 = vperm.xlu0 %845, %v259_v2   ;;  %v263_v7 = vld [vmem:[%s1101_s7 + $0x30] sm:$0xff]  ;;  %v262_v8 = vld [vmem:[%s1101_s7 + $0x28] sm:$0xff]  ;;  %v261_v10 = vld [vmem:[%s1101_s7 + $0x20] sm:$0xff]  ;;  %s250_s17 = scalar_lea.vmem [#allocation7], %s731_s13  ;;  %s627_s30 = scalar_lea.sflag [#allocation4], %s248_s12 }
  0x24   : > { %268 = vperm.xlu2 %847, %v257_v3   ;;  %326 = vmatpush.msra.mxu0 %v319_v9  ;;  %v264_v14 = vld [vmem:[%s1101_s7 + $0x38] sm:$0xff]  ;;  %v258_v15 = vld [vmem:[%s1101_s7 + $0x8] sm:$0xff]  ;;  %s639_s25 = sshll.u32 %s250_s17, 4  ;;  %s923_s6 = sshra.s32 %s642_s26, 4  ;;  %s640_s25 = int_to_ptr.vmem [resolvable:$true] %s639_s25  ;;  %s924_s6 = int_to_ptr.hbm [resolvable:$true] %s923_s6 }
  0x25   : > { %752 = vmatpush.msra.mxu2 %v319_v9  ;;  %753 = vmatpush.msra.mxu3 %v319_v9  ;;  %v579_v9 = vld [vmem:[#allocation5 + $0x68] sm:$0xff]  ;;  %s925_s22 = scalar_lea.hbm %s924_s6, 8  ;;  %p930_p3 = scmp.lt.s32.totalorder %s924_s6, %s1376_s5 }
  0x26   : > { %327 = vmatpush.msra.mxu0 %v318_v11  ;;  %605 = vmatpush.msra.mxu1 %v581_v60  ;;  %p926_p0 = scmp.ne.s32.totalorder %s924_s6, %s925_s22 }
  0x27   : > { %754 = vmatpush.msra.mxu2 %v318_v11  ;;  %755 = vmatpush.msra.mxu3 %v318_v11 }
  0x28   : > { %328 = vmatpush.msra.mxu0 %v317_v12  ;;  %606 = vmatpush.msra.mxu1 %v580_v0  ;;  %v570_v0 = vld [vmem:[#allocation5 + $0x20] sm:$0xff]  ;;  %p927_p1 = pnand %p926_p0, %p1058_p5 }
  0x29   : > { %756 = vmatpush.msra.mxu2 %v317_v12  ;;  %757 = vmatpush.msra.mxu3 %v317_v12 }
  0x2a   : > { %329 = vmatpush.msra.mxu0 %v316_v13  ;;  %607 = vmatpush.msra.mxu1 %v579_v9  ;;  %v569_v9 = vld [vmem:[#allocation5 + $0x18] sm:$0xff]  ;;  %p928_p2 = pneg %p927_p1 }
  0x2b   : > { %286 = vperm.xlu1 %846, %v263_v7   ;;  %283 = vperm.xlu0 %845, %v262_v8  }
  0x2c   : > { %280 = vperm.xlu2 %847, %v261_v10   ;;  %758 = vmatpush.msra.mxu2 %v316_v13 }
  0x2d   : > { %330 = vmatpush.msra.mxu0 %v315_v16  ;;  %759 = vmatpush.msra.mxu3 %v316_v13 }
  0x2e   : > { %760 = vmatpush.msra.mxu2 %v315_v16 }
  0x2f   : > { %331 = vmatpush.msra.mxu0 %v314_v17  ;;  %761 = vmatpush.msra.mxu3 %v315_v16  ;;  %v578_v16 = vld [vmem:[#allocation5 + $0x60] sm:$0xff] }
  0x30   : > { %762 = vmatpush.msra.mxu2 %v314_v17  ;;  %608 = vmatpush.msra.mxu1 %v578_v16 }
  0x31   : > { %332 = vmatpush.msra.mxu0 %v313_v18  ;;  %763 = vmatpush.msra.mxu3 %v314_v17 }
  0x32   : > { %764 = vmatpush.msra.mxu2 %v313_v18 }
  0x33   : > { %289 = vperm.xlu0 %845, %v264_v14   ;;  %271 = vperm.xlu1 %846, %v258_v15  }
  0x34   : > { %333 = vmatpush.msra.mxu0 %v312_v19  ;;  %766 = vmatpush.msra.mxu2 %v312_v19 }
  0x35   : > { %765 = vmatpush.msra.mxu3 %v313_v18 }
  0x36   : > { %334 = vmatpush.msra.mxu0 %v311_v20  ;;  %768 = vmatpush.msra.mxu2 %v311_v20 }
  0x37   : > { %767 = vmatpush.msra.mxu3 %v312_v19 }
  0x38   : > { %335 = vmatpush.msra.mxu0 %v310_v21  ;;  %770 = vmatpush.msra.mxu2 %v310_v21 }
  0x39   : > { %769 = vmatpush.msra.mxu3 %v311_v20 }
  0x3a   : > { %336 = vmatpush.msra.mxu0 %v309_v22  ;;  %772 = vmatpush.msra.mxu2 %v309_v22 }
  0x3b   : > { %771 = vmatpush.msra.mxu3 %v310_v21 }
  0x3c   : > { %337 = vmatpush.msra.mxu0 %v308_v23  ;;  %774 = vmatpush.msra.mxu2 %v308_v23 }
  0x3d   : > { %773 = vmatpush.msra.mxu3 %v309_v22 }
  0x3e   : > { %338 = vmatpush.msra.mxu0 %v307_v24  ;;  %776 = vmatpush.msra.mxu2 %v307_v24 }
  0x3f   : > { %775 = vmatpush.msra.mxu3 %v308_v23 }
  0x41   : > { %777 = vmatpush.msra.mxu3 %v307_v24  ;;  %v577_v24 = vld [vmem:[#allocation5 + $0x58] sm:$0xff] }
  0x42   : > { %609 = vmatpush.msra.mxu1 %v577_v24  ;;  %v567_v24 = vld [vmem:[#allocation5 + $0x8] sm:$0xff] }
  0x7e   : > { %v269_v27 = vpop.permute.xlu2 %268 }
  0x7f   : > { %vm291_vm0 = vcmp.eq.s32.totalorder %v269_v27, %v266_v26 }
  0x80   : > { %734 = vmatmul.msk.f32.vlgmr.msra.gmra.mxu0 %vm291_vm0, %v986_v28  ;;  %vm600_vm0 = vcmask 1046534  }
  0x86   : > { %v281_v33 = vpop.permute.xlu2 %280 }
  0x87   : > { %vm295_vm4 = vcmp.eq.s32.totalorder %v281_v33, %v266_v26 }
  0x95   : > { %v278_v29 = vpop.permute.xlu1 %277  ;;  %v275_v30 = vpop.permute.xlu0 %274 }
  0x96   : > { %vm293_vm1 = vcmp.eq.s32.totalorder %v275_v30, %v266_v26  ;;  %vm294_vm2 = vcmp.eq.s32.totalorder %v278_v29, %v266_v26  ;;  %v576_v29 = vld [vmem:[#allocation5 + $0x50] sm:$0xff] }
  0x97   : > { %736 = vmatmul.msk.f32.vlgmr.msra.gmra.mxu2 %vm293_vm1, %v986_v28  ;;  %610 = vmatpush.msra.mxu1 %v576_v29  ;;  %vm602_vm1 = vcmask 1047559  }
  0x9d   : > { %v287_v31 = vpop.permute.xlu1 %286  ;;  %v284_v32 = vpop.permute.xlu0 %283 }
  0x9e   : > { %vm296_vm3 = vcmp.eq.s32.totalorder %v284_v32, %v266_v26  ;;  %vm297_vm6 = vcmp.eq.s32.totalorder %v287_v31, %v266_v26 }
  0x9f   : > { %737 = vmatmul.msk.f32.gmra.mxu2 %vm294_vm2, %v986_v28  ;;  %739 = vmatmul.msk.f32.vlgmr.msra.gmra.mxu3 %vm296_vm3, %v986_v28 }
  0xa5   : > { %v272_v34 = vpop.permute.xlu1 %271  ;;  %v290_v35 = vpop.permute.xlu0 %289 }
  0xa6   : > { %vm292_vm5 = vcmp.eq.s32.totalorder %v272_v34, %v266_v26  ;;  %vm298_vm7 = vcmp.eq.s32.totalorder %v290_v35, %v266_v26  ;;  %v1256_v26 = vld [vmem:[%s1373_s2] ss:$0 sm:$0xff]  ;;  %v575_v34 = vld [vmem:[#allocation5 + $0x48] sm:$0xff] }
  0xa7   : > { %735 = vmatmul.msk.f32.gmra.mxu0 %vm292_vm5, %v986_v28  ;;  %738 = vmatmul.msk.f32.gmra.mxu2 %vm295_vm4, %v986_v28 }
  0xa8   : > { %740 = vmatmul.msk.f32.gmra.mxu3 %vm297_vm6, %v986_v28  ;;  %611 = vmatpush.msra.mxu1 %v575_v34 }
  0xb0   : > { %741 = vmatmul.msk.f32.gmra.mxu3 %vm298_vm7, %v986_v28 }
  0xfd   : > { %v1160_v36 = vpop.f32.mrf.mxu0 }
  0xfe   : > { %407 = vrot.lane.b32.xlu1 %v1160_v36, %s987_s8  ;;  %364 = vrot.lane.b32.xlu2 %v1160_v36, %s988_s9 }
 0x106   : > { %448 = vrot.lane.b32.xlu2 %v1160_v36, %s989_s10 }
 0x11a   : > { %v1165_v37 = vpop.f32.mrf.mxu2 }
 0x11b   : > { %411 = vrot.lane.b32.xlu0 %v1165_v37, %s987_s8  ;;  %368 = vrot.lane.b32.xlu1 %v1165_v37, %s988_s9 }
 0x122   : > { %v1169_v38 = vpop.f32.mrf.mxu3  ;;  %v1174_v40 = vpop.f32.mrf.mxu2 }
 0x123   : > { %417 = vrot.lane.b32.xlu0 %v1169_v38, %s987_s8  ;;  %374 = vrot.lane.b32.xlu1 %v1169_v38, %s988_s9 }
 0x124   : > { %v343_v39 = vpop.f32.mrf.mxu0 }
 0x125   : > { %409 = vrot.lane.b32.xlu2 %v343_v39, %s987_s8 }
 0x12a   : > { %v1181_v42 = vpop.f32.mrf.mxu2 }
 0x12b   : > { %452 = vrot.lane.b32.xlu1 %v1165_v37, %s989_s10  ;;  %366 = vrot.lane.b32.xlu0 %v343_v39, %s988_s9  ;;  %v1179_v41 = vpop.f32.mrf.mxu3 }
 0x12d   : > { %370 = vrot.lane.b32.xlu2 %v1174_v40, %s988_s9 }
 0x133   : > { %454 = vrot.lane.b32.xlu1 %v1174_v40, %s989_s10  ;;  %450 = vrot.lane.b32.xlu0 %v343_v39, %s989_s10  ;;  %v1186_v43 = vpop.f32.mrf.mxu3 }
 0x135   : > { %413 = vrot.lane.b32.xlu2 %v1174_v40, %s987_s8 }
 0x13b   : > { %376 = vrot.lane.b32.xlu0 %v1179_v41, %s988_s9  ;;  %415 = vrot.lane.b32.xlu1 %v1181_v42, %s987_s8 }
 0x13d   : > { %419 = vrot.lane.b32.xlu2 %v1179_v41, %s987_s8 }
 0x143   : > { %421 = vrot.lane.b32.xlu1 %v1186_v43, %s987_s8  ;;  %372 = vrot.lane.b32.xlu0 %v1181_v42, %s988_s9 }
 0x145   : > { %378 = vrot.lane.b32.xlu2 %v1186_v43, %s988_s9 }
 0x14b   : > { %462 = vrot.lane.b32.xlu1 %v1186_v43, %s989_s10  ;;  %456 = vrot.lane.b32.xlu0 %v1181_v42, %s989_s10 }
 0x14d   : > { %458 = vrot.lane.b32.xlu2 %v1169_v38, %s989_s10 }
 0x153   : > { %460 = vrot.lane.b32.xlu0 %v1179_v41, %s989_s10  ;;  %s929_s10 = scalar_lea.hbm %s1376_s5, 16 }
 0x154   : > { %p931_p4 = scmp.lt.s32.totalorder %s929_s10, %s925_s22 }
 0x156   : > { %p932_p7 = por %p931_p4, %p930_p3 }
 0x158   : > { %v1195_v44 = vpop.permute.xlu2 %364  ;;  %p933_p8 = pnand %p932_p7, %p928_p2 }
 0x159   : > { %v380_v58 = vrot.slane %v1195_v44, 1 }
 0x160   : > { %v1197_v45 = vpop.permute.xlu2 %448 }
 0x161   : > { %v464_v10 = vrot.slane %v1197_v45, 3 }
 0x170   : > { %v1199_v46 = vpop.permute.xlu1 %407 }
 0x171   : > { %v423_v1 = vrot.slane %v1199_v46, 2 }
 0x17f   : > { %v410_v47 = vpop.permute.xlu2 %409 }
 0x180   : > { %v424_v2 = vrot.slane %v410_v47, 2 }
 0x182   : > { %v438_v17 = vsel %vm431_vm9, %v423_v1, %v424_v2 }
 0x187   : > { %v1201_v50 = vpop.permute.xlu2 %370 }
 0x188   : > { %v383_v62 = vrot.slane %v1201_v50, 1 }
 0x18d   : > { %v412_v48 = vpop.permute.xlu0 %411  ;;  %v369_v49 = vpop.permute.xlu1 %368 }
 0x18e   : > { %v382_v59 = vrot.slane %v369_v49, 1  ;;  %v425_v3 = vrot.slane %v412_v48, 2  ;;  %v573_v48 = vld [vmem:[#allocation5 + $0x38] sm:$0xff] }
 0x18f   : > { %v1207_v53 = vpop.permute.xlu2 %413 }
 0x190   : > { %v395_v4 = vsel %vm390_vm8, %v382_v59, %v383_v62  ;;  %v426_v5 = vrot.slane %v1207_v53, 2  ;;  %v437_v20 = vsel %vm431_vm9, %v424_v2, %v425_v3 }
 0x191   : > { %v401_v18 = vadd.f32 %v395_v4, %v1165_v37  ;;  %v574_v37 = vld [vmem:[#allocation5 + $0x40] sm:$0xff] }
 0x192   : > { %v436_v21 = vsel %vm431_vm9, %v425_v3, %v426_v5  ;;  %612 = vmatpush.msra.mxu1 %v574_v37 }
 0x193   : > { %v442_v30 = vadd.f32 %v436_v21, %v401_v18  ;;  %v568_v18 = vld [vmem:[#allocation5 + $0x10] sm:$0xff] }
 0x194   : > { %613 = vmatpush.msra.mxu1 %v573_v48 }
 0x195   : > { %v1203_v51 = vpop.permute.xlu0 %417  ;;  %v1205_v52 = vpop.permute.xlu1 %374 }
 0x196   : > { %v385_v2 = vrot.slane %v1205_v52, 1 }
 0x197   : > { %v1233_v11 = vpop.permute.xlu2 %419 }
 0x19d   : > { %v453_v54 = vpop.permute.xlu1 %452  ;;  %v367_v55 = vpop.permute.xlu0 %366 }
 0x19e   : > { %v381_v56 = vrot.slane %v367_v55, 1  ;;  %v466_v14 = vrot.slane %v453_v54, 3  ;;  %v572_v55 = vld [vmem:[#allocation5 + $0x30] sm:$0xff] }
 0x19f   : > { %614 = vmatpush.msra.mxu1 %v572_v55 }
 0x1a0   : > { %v397_v61 = vsel %vm390_vm8, %v380_v58, %v381_v56  ;;  %v396_v63 = vsel %vm390_vm8, %v381_v56, %v382_v59  ;;  %v571_v56 = vld [vmem:[#allocation5 + $0x28] sm:$0xff]  ;;  %v1269_v59 = vld [vmem:[#allocation2] sm:$0xff] }
 0x1a1   : > { %v399_v6 = vadd.f32 %v397_v61, %v1160_v36  ;;  %v400_v12 = vadd.f32 %v396_v63, %v343_v39  ;;  %v1265_v39 = vpop.permute.xlu2 %378  ;;  %615 = vmatpush.msra.mxu1 %v571_v56 }
 0x1a2   : > { %v387_v3 = vrot.slane %v1265_v39, 1 }
 0x1a3   : > { %v440_v22 = vadd.f32 %v438_v17, %v399_v6  ;;  %v441_v25 = vadd.f32 %v437_v20, %v400_v12  ;;  %616 = vmatpush.msra.mxu1 %v570_v0 }
 0x1a5   : > { %v1230_v7 = vpop.permute.xlu1 %454  ;;  %v451_v8 = vpop.permute.xlu0 %450  ;;  %617 = vmatpush.msra.mxu1 %v569_v9 }
 0x1a6   : > { %v465_v13 = vrot.slane %v451_v8, 3  ;;  %v467_v15 = vrot.slane %v1230_v7, 3 }
 0x1a7   : > { %618 = vmatpush.msra.mxu1 %v568_v18 }
 0x1a8   : > { %v479_v19 = vsel %vm472_vm10, %v464_v10, %v465_v13  ;;  %v478_v23 = vsel %vm472_vm10, %v465_v13, %v466_v14  ;;  %v477_v27 = vsel %vm472_vm10, %v466_v14, %v467_v15 }
 0x1a9   : > { %v481_v28 = vadd.f32 %v479_v19, %v440_v22  ;;  %v482_v31 = vadd.f32 %v478_v23, %v441_v25  ;;  %v483_v35 = vadd.f32 %v477_v27, %v442_v30  ;;  %v398_v19 = vsel %vm390_vm8, %v387_v3, %v380_v58  ;;  %v459_v21 = vpop.permute.xlu2 %458  ;;  %v566_v30 = vld [vmem:[#allocation5] sm:$0xff]  ;;  %619 = vmatpush.msra.mxu1 %v567_v24 }
 0x1aa   : > { %v428_v22 = vrot.slane %v1203_v51, 2  ;;  %v429_v25 = vrot.slane %v1233_v11, 2  ;;  %v406_v58 = vadd.f32 %v398_v19, %v1186_v43 }
 0x1ab   : > { %v493_v36 = vadd.f32 %v1256_v26, %v481_v28  ;;  %v494_v47 = vadd.f32 %v1256_v26, %v482_v31  ;;  %v495_v49 = vadd.f32 %v1256_v26, %v483_v35  ;;  %v469_v28 = vrot.slane %v459_v21, 3  ;;  %620 = vmatpush.msra.mxu1 %v566_v30 }
 0x1ac   : > { %v433_v7 = vsel %vm431_vm9, %v428_v22, %v429_v25 }
 0x1ad   : > { %v1262_v32 = vpop.permute.xlu0 %376  ;;  %v416_v33 = vpop.permute.xlu1 %415  ;;  %v501_v54 = vmax.f32 %v493_v36, 0.0  ;;  %v502_v60 = vmax.f32 %v494_v47, 0.0  ;;  %v503_v4 = vmax.f32 %v495_v49, 0.0 }
 0x1ae   : > { %v386_v16 = vrot.slane %v1262_v32, 1  ;;  %v427_v17 = vrot.slane %v416_v33, 2 }
 0x1af   : > { %v510_v8 = vmul.f32 %v1269_v59, %v501_v54  ;;  %v511_v12 = vmul.f32 %v1269_v59, %v502_v60  ;;  %v512_v20 = vmul.f32 %v1269_v59, %v503_v4 }
 0x1b0   : > { %v392_v51 = vsel %vm390_vm8, %v385_v2, %v386_v16  ;;  %v435_v46 = vsel %vm431_vm9, %v426_v5, %v427_v17  ;;  %v391_v49 = vsel %vm390_vm8, %v386_v16, %v387_v3 }
 0x1b1   : > { %v518_v50 = vrot.slane %v510_v8, 4  ;;  %v524_v27 = vrot.slane %v511_v12, 4  ;;  %v530_v11 = vrot.slane %v512_v20, 4  ;;  %v404_v45 = vadd.f32 %v392_v51, %v1169_v38 }
 0x1b3   : > { %v519_v43 = vadd.f32 %v518_v50, %v510_v8  ;;  %v525_v35 = vadd.f32 %v524_v27, %v511_v12  ;;  %v531_v48 = vadd.f32 %v530_v11, %v512_v20  ;;  %v445_v4 = vadd.f32 %v433_v7, %v404_v45 }
 0x1b5   : > { %v1271_v61 = vpop.permute.xlu1 %421  ;;  %v373_v63 = vpop.permute.xlu0 %372  ;;  %v526_v56 = vrot.slane %v525_v35, 2  ;;  %v532_v3 = vrot.slane %v531_v48, 2 }
 0x1b6   : > { %v384_v6 = vrot.slane %v373_v63, 1  ;;  %v430_v13 = vrot.slane %v1271_v61, 2  ;;  %v405_v61 = vadd.f32 %v391_v49, %v1179_v41 }
 0x1b7   : > { %v527_v16 = vadd.f32 %v526_v56, %v525_v35  ;;  %v533_v24 = vadd.f32 %v532_v3, %v531_v48 }
 0x1b8   : > { %v393_v14 = vsel %vm390_vm8, %v384_v6, %v385_v2  ;;  %v394_v52 = vsel %vm390_vm8, %v383_v62, %v384_v6  ;;  %v439_v44 = vsel %vm431_vm9, %v430_v13, %v423_v1  ;;  %v432_v60 = vsel %vm431_vm9, %v429_v25, %v430_v13 }
 0x1b9   : > { %v402_v23 = vadd.f32 %v394_v52, %v1174_v40  ;;  %v403_v62 = vadd.f32 %v393_v14, %v1181_v42  ;;  %v434_v40 = vsel %vm431_vm9, %v427_v17, %v428_v22  ;;  %v447_v32 = vadd.f32 %v439_v44, %v406_v58 }
 0x1ba   : > { %v446_v8 = vadd.f32 %v432_v60, %v405_v61  ;;  %v528_v27 = vrot.slane %v527_v16, 1  ;;  %v534_v30 = vrot.slane %v533_v24, 1 }
 0x1bb   : > { %v444_v33 = vadd.f32 %v434_v40, %v403_v62  ;;  %v443_v34 = vadd.f32 %v435_v46, %v402_v23 }
 0x1bc   : > { %v529_v46 = vadd.f32 %v528_v27, %v527_v16  ;;  %v535_v35 = vadd.f32 %v534_v30, %v533_v24 }
 0x1bd   : > { %v463_v42 = vpop.permute.xlu1 %462  ;;  %v457_v29 = vpop.permute.xlu0 %456 }
 0x1be   : > { %v471_v1 = vrot.slane %v463_v42, 3  ;;  %v468_v31 = vrot.slane %v457_v29, 3 }
 0x1c0   : > { %v480_v36 = vsel %vm472_vm10, %v471_v1, %v464_v10  ;;  %v475_v37 = vsel %vm472_vm10, %v468_v31, %v469_v28  ;;  %v476_v53 = vsel %vm472_vm10, %v467_v15, %v468_v31  ;;  %v520_v15 = vrot.slane %v519_v43, 2 }
 0x1c1   : > { %v488_v5 = vadd.f32 %v480_v36, %v447_v32  ;;  %v484_v39 = vadd.f32 %v476_v53, %v443_v34  ;;  %v485_v47 = vadd.f32 %v475_v37, %v444_v33 }
 0x1c2   : > { %v521_v52 = vadd.f32 %v520_v15, %v519_v43 }
 0x1c3   : > { %v500_v10 = vadd.f32 %v1256_v26, %v488_v5  ;;  %v496_v54 = vadd.f32 %v1256_v26, %v484_v39  ;;  %v497_v55 = vadd.f32 %v1256_v26, %v485_v47 }
 0x1c4   : > { %v522_v25 = vrot.slane %v521_v52, 1 }
 0x1c5   : > { %v508_v63 = vmax.f32 %v500_v10, 0.0  ;;  %v504_v0 = vmax.f32 %v496_v54, 0.0  ;;  %v505_v2 = vmax.f32 %v497_v55, 0.0  ;;  %v461_v38 = vpop.permute.xlu0 %460 }
 0x1c6   : > { %v470_v6 = vrot.slane %v461_v38, 3  ;;  %v523_v11 = vadd.f32 %v522_v25, %v521_v52 }
 0x1c7   : > { %v517_v9 = vmul.f32 %v1269_v59, %v508_v63  ;;  %v513_v12 = vmul.f32 %v1269_v59, %v504_v0  ;;  %v514_v14 = vmul.f32 %v1269_v59, %v505_v2 }
 0x1c8   : > { %v473_v13 = vsel %vm472_vm10, %v470_v6, %v471_v1  ;;  %v474_v41 = vsel %vm472_vm10, %v469_v28, %v470_v6  ;;  %v591_v37 = vsel %vm590_vm11, %v529_v46, %v523_v11 }
 0x1c9   : > { %v536_v17 = vrot.slane %v513_v12, 4  ;;  %v542_v18 = vrot.slane %v514_v14, 4  ;;  %v486_v19 = vadd.f32 %v474_v41, %v445_v4  ;;  %v487_v20 = vadd.f32 %v473_v13, %v446_v8 }
 0x1ca   : > { %v560_v21 = vrot.slane %v517_v9, 4  ;;  %v593_v45 = vsel %vm592_vm12, %v535_v35, %v591_v37 }
 0x1cb   : > { %v537_v22 = vadd.f32 %v536_v17, %v513_v12  ;;  %v543_v50 = vadd.f32 %v542_v18, %v514_v14  ;;  %v498_v23 = vadd.f32 %v1256_v26, %v486_v19  ;;  %v499_v62 = vadd.f32 %v1256_v26, %v487_v20 }
 0x1cc   : > { %v561_v44 = vadd.f32 %v560_v21, %v517_v9 }
 0x1cd   : > { %v538_v58 = vrot.slane %v537_v22, 2  ;;  %v544_v51 = vrot.slane %v543_v50, 2  ;;  %v506_v40 = vmax.f32 %v498_v23, 0.0  ;;  %v507_v57 = vmax.f32 %v499_v62, 0.0 }
 0x1ce   : > { %v562_v32 = vrot.slane %v561_v44, 2 }
 0x1cf   : > { %v539_v28 = vadd.f32 %v538_v58, %v537_v22  ;;  %v515_v42 = vmul.f32 %v1269_v59, %v506_v40  ;;  %v516_v29 = vmul.f32 %v1269_v59, %v507_v57  ;;  %v545_v1 = vadd.f32 %v544_v51, %v543_v50 }
 0x1d0   : > { %v563_v47 = vadd.f32 %v562_v32, %v561_v44 }
 0x1d1   : > { %v548_v31 = vrot.slane %v515_v42, 4  ;;  %v554_v26 = vrot.slane %v516_v29, 4  ;;  %v540_v43 = vrot.slane %v539_v28, 1  ;;  %v546_v36 = vrot.slane %v545_v1, 1 }
 0x1d2   : > { %v564_v55 = vrot.slane %v563_v47, 1 }
 0x1d3   : > { %v549_v33 = vadd.f32 %v548_v31, %v515_v42  ;;  %v555_v34 = vadd.f32 %v554_v26, %v516_v29  ;;  %v541_v53 = vadd.f32 %v540_v43, %v539_v28  ;;  %v547_v49 = vadd.f32 %v546_v36, %v545_v1 }
 0x1d4   : > { %v565_v61 = vadd.f32 %v564_v55, %v563_v47 }
 0x1d5   : > { %v550_v5 = vrot.slane %v549_v33, 2  ;;  %v556_v39 = vrot.slane %v555_v34, 2  ;;  %v595_v7 = vsel %vm594_vm13, %v541_v53, %v593_v45 }
 0x1d6   : > { %v597_v60 = vsel %vm596_vm14, %v547_v49, %v595_v7 }
 0x1d7   : > { %v551_v59 = vadd.f32 %v550_v5, %v549_v33  ;;  %v557_v48 = vadd.f32 %v556_v39, %v555_v34 }
 0x1d9   : > { %v552_v10 = vrot.slane %v551_v59, 1  ;;  %v558_v54 = vrot.slane %v557_v48, 1 }
 0x1db   : > { %v553_v15 = vadd.f32 %v552_v10, %v551_v59  ;;  %v559_v56 = vadd.f32 %v558_v54, %v557_v48 }
 0x1dd   : > { %v599_v63 = vsel %vm598_vm15, %v553_v15, %v597_v60 }
 0x1de   : > { %v601_v0 = vsel %vm600_vm0, %v559_v56, %v599_v63 }
 0x1df   : > { %v603_v2 = vsel %vm602_vm1, %v565_v61, %v601_v0 }
 0x1e0   : > { %621 = vmatmul.f32.vlgmr.msra.gmra.mxu1 %v603_v2 }
 0x25d   : > { %v622_v38 = vpop.f32.mrf.mxu1 }
 0x25e   : > { %625 = vst [vmem:[%s250_s17] sm:$0xff] %v622_v38 }
 0x25f   : > { %936 = shalt.err (!%p933_p8)
}
 0x260   : > { %786 = dma.vmem_to_hbm [thread:$0]  (%p1058_p5), %s640_s25, 128, %s642_s26, %s627_s30  }
 0x261 PF: > { %p803_p9 = scmp.ge.s32.totalorder %s979_s21, 2  ;;  %s653_s7 = sand.u32 1, %s967_s18  }
 0x262   : > { %s654_s12 = scalar_lea.sflag [#allocation4], %s653_s7 }
 0x263   : > { %p796_p10 = pnand %p803_p9, %p1062_p6 }
 0x265   : > { %p797_p11 = pneg %p796_p10 }
 0x267   : > { %962 = dma.done.wait (%p797_p11), %s654_s12, 128  }
 0x268   : > { %964 = vsyncadd (%p797_p11), %s654_s12, 4294967168  ;;  %p17_p12 = scmp.ge.s32.totalorder %s1045_s24, 4   ;;  %s1380_s18 = smov %s971_s19 }
 0x269   : > { %s1381_s19 = smov %s975_s20  ;;  %s1382_s20 = smov %s1056_s27 }
 0x26a   : > { %s1383_s21 = smov %s1045_s24  ;;  %19 = sbr.rel (!%p17_p12) target bundleno = 5 (0x5), region = 84 }
 0x26f   :  { %660 = vsyncpa [#allocation3], 1 }
 0x270   :  { %662 = vsyncpa [#allocation3 + $0x1], 1 }
 0x271   :  { %663 = vsyncpa [#allocation6], 1 }
 0x272   :  { %664 = vsyncpa [#allocation4], 1 }
 0x273   :  { %666 = vsyncpa [#allocation4 + $0x1], 1 }

</bundles_post_ra>
